<compile_context>
chip_gen: v7x
topology: tpu7x:2x2x1
jax: 0.10.0
libtpu: 0.0.40
codegen_flags: <defaults>
</compile_context>

<pallas_src>
import numpy as np
import jax
import jax.numpy as jnp
from jax.experimental import pallas as pl
from jax.experimental.pallas import tpu as pltpu

BN_EPS = 1e-4
LANES = 128
MAX_ROW_TILE_MM = 1024        # grouped-row tile cap for the conv matmul
MAX_ROW_TILE_EW = 2048        # grouped-row tile cap for the elementwise BN+ReLU pass
MM_TILE_BYTES = 4 << 20       # per-buffer budget for one patch tile
VMEM_LIMIT = 32 * 1024 * 1024 # explicit scoped-VMEM limit (fits v5e/v6e/v7x)


def _round_up(x, m):
    return ((x + m - 1) // m) * m


def _next_pow2(x):
    return 1 << (max(int(x), 1) - 1).bit_length()


def _mm_row_tiles(m, bytes_per_row):
    """Grouped-row tile for the matmul: as large as the per-buffer VMEM budget allows
    (<= MAX_ROW_TILE_MM), multiple of 16 (bf16 sublane tile), and exposing >= 2 grid
    steps when possible so the 'parallel' axis feeds both v7x TensorCores."""
    cap = min(MAX_ROW_TILE_MM,
              max(16, (MM_TILE_BYTES // max(bytes_per_row, 1)) // 16 * 16))
    m16 = _round_up(m, 16)
    if m16 <= cap:
        t = _round_up((m16 + 1) // 2, 16) if m16 > 16 else 16
    else:
        t = cap
    return _round_up(m, t), t


def _ew_row_tile(mgp, tmm):
    """Row tile for the elementwise pass: a multiple of the matmul tile that divides the
    padded row count, <= MAX_ROW_TILE_EW, keeping >= 2 grid steps when possible."""
    nt = mgp // tmm
    best = tmm
    for f in range(1, nt + 1):
        if nt % f == 0 and tmm * f <= MAX_ROW_TILE_EW and nt // f >= min(2, nt):
            best = max(best, tmm * f)
    return best


def _input_spec(shape, index_map, n_steps):
    """Triple-buffer the streamed input when there are enough grid steps (v7x: 2 TCs share
    HBM; deeper buffering hides DMA jitter).  Falls back to default double-buffering."""
    if n_steps >= 3 and hasattr(pl, "Buffered"):
        try:
            return pl.BlockSpec(shape, index_map, pipeline_mode=pl.Buffered(3))
        except TypeError:  # older JAX without pipeline_mode
            pass
    return pl.BlockSpec(shape, index_map)


# ----------------------------------------------------------------------------
# Spherical sampling coordinates (deterministic numpy, mirrors spherenet code)
# ----------------------------------------------------------------------------
def _get_xy(delta_phi, delta_theta):
    t_th, t_ph = np.tan(delta_theta), np.tan(delta_phi)
    sec = 1.0 / np.cos(delta_theta)
    return np.array([
        [(-t_th,  sec * t_ph), (0.0,  t_ph), (t_th,  sec * t_ph)],
        [(-t_th,  0.0),        (1.0,  1.0),  (t_th,  0.0)],
        [(-t_th, -sec * t_ph), (0.0, -t_ph), (t_th, -sec * t_ph)],
    ])


def _cal_index(h, w, img_r, img_c):
    phi = -((img_r + 0.5) / h * np.pi - np.pi / 2)
    theta = (img_c + 0.5) / w * 2 * np.pi - np.pi
    delta_phi = np.pi / h
    delta_theta = 2 * np.pi / w
    xys = _get_xy(delta_phi, delta_theta)
    x, y = xys[..., 0], xys[..., 1]
    rho = np.sqrt(x ** 2 + y ** 2)
    v = np.arctan(rho)
    new_phi = np.arcsin(np.clip(np.cos(v) * np.sin(phi)
                                + y * np.sin(v) * np.cos(phi) / rho, -1.0, 1.0))
    new_theta = theta + np.arctan(
        x * np.sin(v) / (rho * np.cos(phi) * np.cos(v) - y * np.sin(phi) * np.sin(v)))
    new_r = (-new_phi + np.pi / 2) * h / np.pi - 0.5
    new_c = (new_theta + np.pi) * w / 2 / np.pi - 0.5
    new_c = (new_c + w) % w
    res = np.stack([new_r, new_c], axis=-1)
    res[1, 1] = (img_r, img_c)
    return res


def sphere_sample_coords(h, w, stride=1):
    """(r_eff, c_eff) of shape (Hs, Ws, 3, 3): pixel-space sample positions equivalent to
    gen_grid_coordinates + F.grid_sample unnormalization (align_corners=False)."""
    co = np.array([[_cal_index(h, w, i, j) for j in range(0, w, stride)]
                   for i in range(0, h, stride)])          # (Hs, Ws, 3, 3, 2)
    r, c = co[..., 0], co[..., 1]
    return (r - 0.5).astype(np.float32), (c - 0.5).astype(np.float32)


def _corner_tables(H, W, r_eff, c_eff):
    """Static int32 corner indices + f32 bilinear weights for the 4 grid_sample corners
    (zeros padding).  Depend only on spatial geometry, reused across batch/channels."""
    r = r_eff.reshape(-1).astype(np.float64)
    c = c_eff.reshape(-1).astype(np.float64)
    r0, c0 = np.floor(r), np.floor(c)
    fr, fc = r - r0, c - c0
    idxs, wgts = [], []
    for dr, dc, w in ((0, 0, (1 - fr) * (1 - fc)), (0, 1, (1 - fr) * fc),
                      (1, 0, fr * (1 - fc)),       (1, 1, fr * fc)):
        rr, cc = r0 + dr, c0 + dc
        valid = (rr >= 0) & (rr <= H - 1) & (cc >= 0) & (cc <= W - 1)
        idx = (np.clip(rr, 0, H - 1) * W + np.clip(cc, 0, W - 1)).astype(np.int32)
        idxs.append(idx)
        wgts.append((w * valid).astype(np.float32))
    return np.stack(idxs), np.stack(wgts)                   # (4, Ns), (4, Ns)


# ----------------------------------------------------------------------------
# JAX glue: bilinear grid_sample gather (fusible take-chain), packed im2col
# ----------------------------------------------------------------------------
def _bilinear_gather(x_nhwc, idx_tab, wgt_tab):
    """Bilinear gather, f32 accumulation.  Returns (B, Ns, C); Ns = Hs*Ws*9.  Kept as a
    jnp take-chain so elementwise producers/consumers fuse into it under jit."""
    B, H, W, C = x_nhwc.shape
    x_flat = x_nhwc.astype(jnp.float32).reshape(B, H * W, C)
    out = None
    for q in range(4):
        t = jnp.take(x_flat, jnp.asarray(idx_tab[q]), axis=1)
        t = t * jnp.asarray(wgt_tab[q])[None, :, None]
        out = t if out is None else out + t
    return out


def _packed_patches(x_nhwc, idx_tab, wgt_tab, Kp, Mgp, pack):
    """im2col patches emitted directly in the packed/padded bf16 layout consumed by the
    matmul kernel: one cast after the f32 bilinear accumulation, K-pad and row-pad folded
    into a single pad, then a copy-free reshape into grouped rows."""
    B, H, W, Cin = x_nhwc.shape
    K = 9 * Cin
    M = B * H * W
    g = _bilinear_gather(x_nhwc, idx_tab, wgt_tab)          # (B, H*W*9, Cin) f32
    p = g.astype(jnp.bfloat16).reshape(M, K)
    p = jnp.pad(p, ((0, Mgp * pack - M), (0, Kp - K)))
    return p.reshape(Mgp, pack * Kp)


# ----------------------------------------------------------------------------
# Pallas kernels
# ----------------------------------------------------------------------------
def _conv_bn_stats_kernel(p_ref, w_ref, y_ref, st_ref):
    # bf16 operands on the MXU, f32 accumulation; per-channel sum/sumsq fused so y is
    # never re-read for BN statistics.  y is stored bf16 (halves the conv->bn hand-off);
    # the stats come from the f32 accumulator before the cast.
    y = jnp.dot(p_ref[...], w_ref[...], preferred_element_type=jnp.float32)
    y_ref[...] = y.astype(y_ref.dtype)
    s = jnp.sum(y, axis=0, keepdims=True)                   # per-lane partial sum
    sq = jnp.sum(y * y, axis=0, keepdims=True)              # per-lane partial sumsq
    pad = jnp.zeros((6, s.shape[1]), jnp.float32)           # pad stats to 8 sublanes
    st_ref[0] = jnp.concatenate([s, sq, pad], axis=0)       # (8, Np) unmasked store


def _bn_relu_kernel(y_ref, scale_ref, shift_ref, o_ref):
    y = y_ref[...].astype(jnp.float32)                      # bf16 in, f32 compute
    o_ref[...] = jnp.maximum(y * scale_ref[...] + shift_ref[...], 0.0)


# ----------------------------------------------------------------------------
# pallas_call wrappers
# ----------------------------------------------------------------------------
def conv_matmul_stats(p, w, tmg):
    """Packed conv-as-matmul fused with per-tile channel sum / sumsq partials."""
    Mg, Kpp = p.shape
    Np = w.shape[1]
    nt = Mg // tmg
    flops = 2 * Mg * Kpp * Np
    bytes_acc = p.size * 2 + w.size * 2 + Mg * Np * 2 + nt * 8 * Np * 4
    return pl.pallas_call(
        _conv_bn_stats_kernel,
        out_shape=(jax.ShapeDtypeStruct((Mg, Np), jnp.bfloat16),
                   jax.ShapeDtypeStruct((nt, 8, Np), jnp.float32)),
        grid_spec=pltpu.PrefetchScalarGridSpec(
            num_scalar_prefetch=0, grid=(nt,),
            in_specs=[_input_spec((tmg, Kpp), lambda i: (i, 0), nt),
                      pl.BlockSpec((Kpp, Np), lambda i: (0, 0))],
            out_specs=(pl.BlockSpec((tmg, Np), lambda i: (i, 0)),
                       pl.BlockSpec((1, 8, Np), lambda i: (i, 0, 0)))),
        compiler_params=pltpu.CompilerParams(
            dimension_semantics=("parallel",),
            vmem_limit_bytes=VMEM_LIMIT),
        cost_estimate=pl.CostEstimate(flops=flops, transcendentals=0,
                                      bytes_accessed=bytes_acc),
    )(p, w)


def bn_relu(y, scale, shift, tb):
    Mg, Np = y.shape
    bytes_acc = Mg * Np * 2 + Mg * Np * 4 + 2 * Np * 4
    return pl.pallas_call(
        _bn_relu_kernel,
        out_shape=jax.ShapeDtypeStruct((Mg, Np), jnp.float32),
        grid_spec=pltpu.PrefetchScalarGridSpec(
            num_scalar_prefetch=0, grid=(Mg // tb,),
            in_specs=[pl.BlockSpec((tb, Np), lambda i: (i, 0)),
                      pl.BlockSpec((1, Np), lambda i: (0, 0)),
                      pl.BlockSpec((1, Np), lambda i: (0, 0))],
            out_specs=pl.BlockSpec((tb, Np), lambda i: (i, 0))),
        compiler_params=pltpu.CompilerParams(
            dimension_semantics=("parallel",),
            vmem_limit_bytes=VMEM_LIMIT),
        cost_estimate=pl.CostEstimate(flops=2 * Mg * Np, transcendentals=0,
                                      bytes_accessed=bytes_acc),
    )(y, scale, shift)


# ----------------------------------------------------------------------------
# Module forward
# ----------------------------------------------------------------------------
def sphere_block(x_nhwc, weight, gamma, beta, idx_tab, wgt_tab, *, pallas_bn_relu):
    """SphereConv2D(bias=False) -> BatchNorm2d(training batch stats, eps=1e-4) -> ReLU.

    pallas_bn_relu=False leaves BN+ReLU as plain jnp so XLA fuses it into the next
    stage's gather (used for block 1, whose output is only consumed by block 2)."""
    B, H, W, Cin = x_nhwc.shape
    Cout = weight.shape[0]
    M = B * H * W
    K = 9 * Cin

    # Lane-dense packing: group `pack` rows so the matmul output has a 128-lane last dim.
    if Cout >= LANES:
        Coutp, pack = _round_up(Cout, LANES), 1
    else:
        Coutp = _next_pow2(Cout)                  # power-of-two divisor of 128
        pack = LANES // Coutp
    Np = pack * Coutp                             # == 128 whenever Cout < 128

    # bf16 sublane alignment (16) and lane-dense patch loads (pack*Kp % 128 == 0).
    k_align = max(16, LANES // pack)
    Kp = _round_up(K, k_align)

    Mg = -(-M // pack)                            # grouped row count
    Mgp, tmg = _mm_row_tiles(Mg, bytes_per_row=pack * Kp * 2)
    Mp = Mgp * pack

    # TODO(synk): gather still outside the kernel; see header TODO on full in-kernel fusion.
    p_packed = _packed_patches(x_nhwc, idx_tab, wgt_tab, Kp, Mgp, pack)

    # (cout,cin,kh,kw) -> (kh,kw,cin,cout), zero-pad, block-diagonalize for the packing.
    # MXU work is 2*M*Kp*128 with or without packing (128-lane hardware); packing only
    # makes the loads/stores lane-dense, so there is no extra inflation even on v5e.
    wf = jnp.transpose(weight, (2, 3, 1, 0)).reshape(K, Cout)
    wf = jnp.pad(wf, ((0, Kp - K), (0, Coutp - Cout)))
    w_mm = jnp.kron(jnp.eye(pack, dtype=wf.dtype), wf) if pack > 1 else wf
    w_mm = w_mm.astype(jnp.bfloat16)

    y_packed, part_stats = conv_matmul_stats(p_packed, w_mm, tmg)

    # Finalize training-mode BN statistics (tiny f32 epilogue).  Padded rows/channels are
    # exact zeros -> no bias; divide by the true row count M.  Single-pass E[x^2]-mean^2
    # with a clamp; documented tolerance vs the f32 reference is ~1e-3 (bf16 operands).
    s_all = jnp.sum(part_stats[:, 0, :], axis=0)
    ss_all = jnp.sum(part_stats[:, 1, :], axis=0)
    s = jnp.sum(s_all.reshape(pack, Coutp), axis=0)[:Cout]
    ss = jnp.sum(ss_all.reshape(pack, Coutp), axis=0)[:Cout]
    mean = s / M
    var = jnp.maximum(ss / M - mean * mean, 0.0)            # biased variance (training BN)
    inv = gamma / jnp.sqrt(var + BN_EPS)
    shift = beta - mean * inv

    if pallas_bn_relu:
        inv_p = jnp.tile(jnp.pad(inv, (0, Coutp - Cout)), pack).reshape(1, Np)
        shift_p = jnp.tile(jnp.pad(shift, (0, Coutp - Cout)), pack).reshape(1, Np)
        tb = _ew_row_tile(Mgp, tmg)                          # decoupled, larger EW tile
        yb = bn_relu(y_packed, inv_p, shift_p, tb)           # lane-dense f32 output
        y = yb.reshape(Mp, Coutp)[:M, :Cout]
    else:
        # Plain jnp BN+ReLU: XLA fuses this elementwise chain into the next gather.
        y = y_packed.reshape(Mp, Coutp)[:M, :Cout].astype(jnp.float32)
        y = jnp.maximum(y * inv[None, :] + shift[None, :], 0.0)
    return y.reshape(B, H, W, Cout)


def sphere_maxpool(x_nhwc, idx_tab, wgt_tab, Hp, Wp):
    """SphereMaxPool2D(stride=2): spherical grid_sample + max over the 3x3 taps.  The
    9-tap max is a jnp reduce fused into the gather take-chain (per perf review: avoids
    a taps HBM round trip and lane-masked (tp, 9, C) blocks)."""
    B, H, W, C = x_nhwc.shape
    g = _bilinear_gather(x_nhwc, idx_tab, wgt_tab)          # (B, Hp*Wp*9, C) f32
    y = jnp.max(g.reshape(B, Hp * Wp, 9, C), axis=2)
    return y.reshape(B, Hp, Wp, C)


def sphere_encoder(x_nchw, params):
    """Returns (y, y_pooled) in NCHW, matching the PyTorch module (training-mode BN)."""
    x = jnp.transpose(x_nchw, (0, 2, 3, 1)).astype(jnp.float32)   # -> NHWC
    B, H, W, _ = x.shape

    r1, c1 = sphere_sample_coords(H, W, stride=1)
    rp, cp = sphere_sample_coords(H, W, stride=2)
    idx1, wgt1 = _corner_tables(H, W, r1, c1)
    idxp, wgtp = _corner_tables(H, W, rp, cp)
    Hp, Wp = rp.shape[:2]

    # Block 1: BN+ReLU left in jnp so it fuses into block 2's gather (h1 is internal).
    h1 = sphere_block(x, params["w1"], params["g1"], params["b1"], idx1, wgt1,
                      pallas_bn_relu=False)
    # Block 2: Pallas BN+ReLU producing the module's f32 output.
    y = sphere_block(h1, params["w2"], params["g2"], params["b2"], idx1, wgt1,
                     pallas_bn_relu=True)
    y_pooled = sphere_maxpool(y, idxp, wgtp, Hp, Wp)

    return (jnp.transpose(y, (0, 3, 1, 2)),
            jnp.transpose(y_pooled, (0, 3, 1, 2)))


# ----------------------------------------------------------------------------
# Deterministic parameter init (kaiming_uniform a=sqrt(5) -> U(-1/sqrt(fan_in), ...))
# ----------------------------------------------------------------------------
def init_params(key, x_channels, y_channels):
    k1, k2 = jax.random.split(key)
    def kaiming(k, out_c, in_c):
        bound = 1.0 / np.sqrt(in_c * 9)
        return jax.random.uniform(k, (out_c, in_c, 3, 3), jnp.float32, -bound, bound)
    return {
        "w1": kaiming(k1, y_channels, x_channels),
        "g1": jnp.ones((y_channels,), jnp.float32),
        "b1": jnp.zeros((y_channels,), jnp.float32),
        "w2": kaiming(k2, y_channels, y_channels),
        "g2": jnp.ones((y_channels,), jnp.float32),
        "b2": jnp.zeros((y_channels,), jnp.float32),
    }


if __name__ == "__main__":
    key = jax.random.PRNGKey(0)
    kx, kp = jax.random.split(key)
    B, Cin, Cout, H, W = 2, 4, 8, 16, 16
    x = jax.random.normal(kx, (B, Cin, H, W), jnp.float32)       # NCHW like PyTorch
    params = init_params(kp, Cin, Cout)

    fwd = jax.jit(sphere_encoder)
    y, y_pooled = fwd(x, params)
    y = jax.block_until_ready(y)
    y_pooled = jax.block_until_ready(y_pooled)

    assert y.shape == (B, Cout, H, W)
    assert y_pooled.shape == (B, Cout, H // 2, W // 2)
    assert bool(jnp.all(jnp.isfinite(y))) and bool(jnp.all(jnp.isfinite(y_pooled)))
    print("KERNEL_OK")
</pallas_src>

<mosaic_0001>
module attributes {stable_mosaic.version = 11 : i64} {
  func.func @_conv_bn_stats_kernel(%arg0: i32, %arg1: memref<16x768xbf16, #tpu.memory_space<vmem>>, %arg2: memref<768x128xbf16, #tpu.memory_space<vmem>>, %arg3: memref<16x128xbf16, #tpu.memory_space<vmem>>, %arg4: memref<1x8x128xf32, #tpu.memory_space<vmem>>) attributes {dimension_semantics = [#tpu.dimension_semantics<parallel>], iteration_bounds = array<i64: 2>, scalar_prefetch = 0 : i64, scratch_operands = 0 : i64, tpu.core_type = #tpu.core_type<tc>, window_params = [{transform_indices = @transform_0, window_bounds = array<i64: 16, 768>}, {pipeline_mode = #tpu.pipeline_mode<synchronous>, transform_indices = @transform_1, window_bounds = array<i64: 768, 128>}, {transform_indices = @transform_2, window_bounds = array<i64: 16, 128>}, {transform_indices = @transform_3, window_bounds = array<i64: 1, 8, 128>}]} {
    %c0 = arith.constant 0 : index
    %c0_0 = arith.constant 0 : index
    %0 = vector.load %arg1[%c0, %c0_0] : memref<16x768xbf16, #tpu.memory_space<vmem>>, vector<16x768xbf16>
    %c0_1 = arith.constant 0 : index
    %c0_2 = arith.constant 0 : index
    %1 = vector.load %arg2[%c0_1, %c0_2] : memref<768x128xbf16, #tpu.memory_space<vmem>>, vector<768x128xbf16>
    %cst = arith.constant dense<0.000000e+00> : vector<16x128xf32>
    %2 = tpu.matmul %0, %1, %cst {dimension_numbers = #tpu.dot_dimension_numbers<[1], [0], [0], [1], [0, 0, 1, 1], [], []>} : vector<16x768xbf16>, vector<768x128xbf16>, vector<16x128xf32> -> vector<16x128xf32>
    %3 = arith.truncf %2 : vector<16x128xf32> to vector<16x128xbf16>
    %c0_3 = arith.constant 0 : index
    %c0_4 = arith.constant 0 : index
    %4 = vector.load %arg3[%c0_3, %c0_4] : memref<16x128xbf16, #tpu.memory_space<vmem>>, vector<16x128xbf16>
    tpu.vector_store %arg3[%c0_3, %c0_4], %3 {strides = array<i32>} : memref<16x128xbf16, #tpu.memory_space<vmem>>, vector<16x128xbf16>,
    %cst_5 = arith.constant dense<0.000000e+00> : vector<128xf32>
    %5 = vector.multi_reduction <add>, %2, %cst_5 [0] : vector<16x128xf32> to vector<128xf32>
    %6 = vector.shape_cast %5 : vector<128xf32> to vector<1x128xf32>
    %7 = arith.mulf %2, %2 : vector<16x128xf32>
    %cst_6 = arith.constant dense<0.000000e+00> : vector<128xf32>
    %8 = vector.multi_reduction <add>, %7, %cst_6 [0] : vector<16x128xf32> to vector<128xf32>
    %9 = vector.shape_cast %8 : vector<128xf32> to vector<1x128xf32>
    %cst_7 = arith.constant 0.000000e+00 : f32
    %10 = vector.broadcast %cst_7 : f32 to vector<6x128xf32>
    %11 = tpu.concatenate %6, %9, %10 in 0 : vector<1x128xf32>, vector<1x128xf32>, vector<6x128xf32> -> vector<8x128xf32>
    %c0_8 = arith.constant 0 : index
    %c0_9 = arith.constant 0 : index
    %c0_10 = arith.constant 0 : index
    %12 = vector.load %arg4[%c0_8, %c0_9, %c0_10] : memref<1x8x128xf32, #tpu.memory_space<vmem>>, vector<1x8x128xf32>
    %13 = vector.shape_cast %12 : vector<1x8x128xf32> to vector<8x128xf32>
    %14 = vector.shape_cast %11 : vector<8x128xf32> to vector<1x8x128xf32>
    tpu.vector_store %arg4[%c0_8, %c0_9, %c0_10], %14 {strides = array<i32>} : memref<1x8x128xf32, #tpu.memory_space<vmem>>, vector<1x8x128xf32>,
    return
  }
  func.func @transform_0(%arg0: i32) -> (i32, i32) {
    %c0_i32 = arith.constant 0 : i32
    %c0_i32_0 = arith.constant 0 : i32
    return %arg0, %c0_i32 : i32, i32
  }
  func.func @transform_1(%arg0: i32) -> (i32, i32) {
    %c0_i32 = arith.constant 0 : i32
    %c0_i32_0 = arith.constant 0 : i32
    %c0_i32_1 = arith.constant 0 : i32
    return %c0_i32, %c0_i32_0 : i32, i32
  }
  func.func @transform_2(%arg0: i32) -> (i32, i32) {
    %c0_i32 = arith.constant 0 : i32
    %c0_i32_0 = arith.constant 0 : i32
    return %arg0, %c0_i32 : i32, i32
  }
  func.func @transform_3(%arg0: i32) -> (i32, i32, i32) {
    %c0_i32 = arith.constant 0 : i32
    %c0_i32_0 = arith.constant 0 : i32
    %c0_i32_1 = arith.constant 0 : i32
    return %arg0, %c0_i32, %c0_i32_0 : i32, i32, i32
  }
}

module attributes {stable_mosaic.version = 11 : i64} {
  func.func @_conv_bn_stats_kernel(%arg0: i32, %arg1: memref<16x1280xbf16, #tpu.memory_space<vmem>>, %arg2: memref<1280x128xbf16, #tpu.memory_space<vmem>>, %arg3: memref<16x128xbf16, #tpu.memory_space<vmem>>, %arg4: memref<1x8x128xf32, #tpu.memory_space<vmem>>) attributes {dimension_semantics = [#tpu.dimension_semantics<parallel>], iteration_bounds = array<i64: 2>, scalar_prefetch = 0 : i64, scratch_operands = 0 : i64, tpu.core_type = #tpu.core_type<tc>, window_params = [{transform_indices = @transform_0, window_bounds = array<i64: 16, 1280>}, {pipeline_mode = #tpu.pipeline_mode<synchronous>, transform_indices = @transform_1, window_bounds = array<i64: 1280, 128>}, {transform_indices = @transform_2, window_bounds = array<i64: 16, 128>}, {transform_indices = @transform_3, window_bounds = array<i64: 1, 8, 128>}]} {
    %c0 = arith.constant 0 : index
    %c0_0 = arith.constant 0 : index
    %0 = vector.load %arg1[%c0, %c0_0] : memref<16x1280xbf16, #tpu.memory_space<vmem>>, vector<16x1280xbf16>
    %c0_1 = arith.constant 0 : index
    %c0_2 = arith.constant 0 : index
    %1 = vector.load %arg2[%c0_1, %c0_2] : memref<1280x128xbf16, #tpu.memory_space<vmem>>, vector<1280x128xbf16>
    %cst = arith.constant dense<0.000000e+00> : vector<16x128xf32>
    %2 = tpu.matmul %0, %1, %cst {dimension_numbers = #tpu.dot_dimension_numbers<[1], [0], [0], [1], [0, 0, 1, 1], [], []>} : vector<16x1280xbf16>, vector<1280x128xbf16>, vector<16x128xf32> -> vector<16x128xf32>
    %3 = arith.truncf %2 : vector<16x128xf32> to vector<16x128xbf16>
    %c0_3 = arith.constant 0 : index
    %c0_4 = arith.constant 0 : index
    %4 = vector.load %arg3[%c0_3, %c0_4] : memref<16x128xbf16, #tpu.memory_space<vmem>>, vector<16x128xbf16>
    tpu.vector_store %arg3[%c0_3, %c0_4], %3 {strides = array<i32>} : memref<16x128xbf16, #tpu.memory_space<vmem>>, vector<16x128xbf16>,
    %cst_5 = arith.constant dense<0.000000e+00> : vector<128xf32>
    %5 = vector.multi_reduction <add>, %2, %cst_5 [0] : vector<16x128xf32> to vector<128xf32>
    %6 = vector.shape_cast %5 : vector<128xf32> to vector<1x128xf32>
    %7 = arith.mulf %2, %2 : vector<16x128xf32>
    %cst_6 = arith.constant dense<0.000000e+00> : vector<128xf32>
    %8 = vector.multi_reduction <add>, %7, %cst_6 [0] : vector<16x128xf32> to vector<128xf32>
    %9 = vector.shape_cast %8 : vector<128xf32> to vector<1x128xf32>
    %cst_7 = arith.constant 0.000000e+00 : f32
    %10 = vector.broadcast %cst_7 : f32 to vector<6x128xf32>
    %11 = tpu.concatenate %6, %9, %10 in 0 : vector<1x128xf32>, vector<1x128xf32>, vector<6x128xf32> -> vector<8x128xf32>
    %c0_8 = arith.constant 0 : index
    %c0_9 = arith.constant 0 : index
    %c0_10 = arith.constant 0 : index
    %12 = vector.load %arg4[%c0_8, %c0_9, %c0_10] : memref<1x8x128xf32, #tpu.memory_space<vmem>>, vector<1x8x128xf32>
    %13 = vector.shape_cast %12 : vector<1x8x128xf32> to vector<8x128xf32>
    %14 = vector.shape_cast %11 : vector<8x128xf32> to vector<1x8x128xf32>
    tpu.vector_store %arg4[%c0_8, %c0_9, %c0_10], %14 {strides = array<i32>} : memref<1x8x128xf32, #tpu.memory_space<vmem>>, vector<1x8x128xf32>,
    return
  }
  func.func @transform_0(%arg0: i32) -> (i32, i32) {
    %c0_i32 = arith.constant 0 : i32
    %c0_i32_0 = arith.constant 0 : i32
    return %arg0, %c0_i32 : i32, i32
  }
  func.func @transform_1(%arg0: i32) -> (i32, i32) {
    %c0_i32 = arith.constant 0 : i32
    %c0_i32_0 = arith.constant 0 : i32
    %c0_i32_1 = arith.constant 0 : i32
    return %c0_i32, %c0_i32_0 : i32, i32
  }
  func.func @transform_2(%arg0: i32) -> (i32, i32) {
    %c0_i32 = arith.constant 0 : i32
    %c0_i32_0 = arith.constant 0 : i32
    return %arg0, %c0_i32 : i32, i32
  }
  func.func @transform_3(%arg0: i32) -> (i32, i32, i32) {
    %c0_i32 = arith.constant 0 : i32
    %c0_i32_0 = arith.constant 0 : i32
    %c0_i32_1 = arith.constant 0 : i32
    return %arg0, %c0_i32, %c0_i32_0 : i32, i32, i32
  }
}

module attributes {stable_mosaic.version = 11 : i64} {
  func.func @_bn_relu_kernel(%arg0: i32, %arg1: memref<16x128xbf16, #tpu.memory_space<vmem>>, %arg2: memref<1x128xf32, #tpu.memory_space<vmem>>, %arg3: memref<1x128xf32, #tpu.memory_space<vmem>>, %arg4: memref<16x128xf32, #tpu.memory_space<vmem>>) attributes {dimension_semantics = [#tpu.dimension_semantics<parallel>], iteration_bounds = array<i64: 2>, scalar_prefetch = 0 : i64, scratch_operands = 0 : i64, tpu.core_type = #tpu.core_type<tc>, window_params = [{transform_indices = @transform_0, window_bounds = array<i64: 16, 128>}, {pipeline_mode = #tpu.pipeline_mode<synchronous>, transform_indices = @transform_1, window_bounds = array<i64: 1, 128>}, {pipeline_mode = #tpu.pipeline_mode<synchronous>, transform_indices = @transform_2, window_bounds = array<i64: 1, 128>}, {transform_indices = @transform_3, window_bounds = array<i64: 16, 128>}]} {
    %c0 = arith.constant 0 : index
    %c0_0 = arith.constant 0 : index
    %0 = vector.load %arg1[%c0, %c0_0] : memref<16x128xbf16, #tpu.memory_space<vmem>>, vector<16x128xbf16>
    %1 = arith.extf %0 : vector<16x128xbf16> to vector<16x128xf32>
    %c0_1 = arith.constant 0 : index
    %c0_2 = arith.constant 0 : index
    %2 = vector.load %arg2[%c0_1, %c0_2] : memref<1x128xf32, #tpu.memory_space<vmem>>, vector<1x128xf32>
    %3 = vector.broadcast %2 : vector<1x128xf32> to vector<16x128xf32>
    %4 = arith.mulf %1, %3 : vector<16x128xf32>
    %c0_3 = arith.constant 0 : index
    %c0_4 = arith.constant 0 : index
    %5 = vector.load %arg3[%c0_3, %c0_4] : memref<1x128xf32, #tpu.memory_space<vmem>>, vector<1x128xf32>
    %6 = vector.broadcast %5 : vector<1x128xf32> to vector<16x128xf32>
    %7 = arith.addf %4, %6 : vector<16x128xf32>
    %cst = arith.constant 0.000000e+00 : f32
    %8 = vector.broadcast %cst : f32 to vector<16x128xf32>
    %9 = arith.maximumf %7, %8 : vector<16x128xf32>
    %c0_5 = arith.constant 0 : index
    %c0_6 = arith.constant 0 : index
    %10 = vector.load %arg4[%c0_5, %c0_6] : memref<16x128xf32, #tpu.memory_space<vmem>>, vector<16x128xf32>
    tpu.vector_store %arg4[%c0_5, %c0_6], %9 {strides = array<i32>} : memref<16x128xf32, #tpu.memory_space<vmem>>, vector<16x128xf32>,
    return
  }
  func.func @transform_0(%arg0: i32) -> (i32, i32) {
    %c0_i32 = arith.constant 0 : i32
    %c0_i32_0 = arith.constant 0 : i32
    return %arg0, %c0_i32 : i32, i32
  }
  func.func @transform_1(%arg0: i32) -> (i32, i32) {
    %c0_i32 = arith.constant 0 : i32
    %c0_i32_0 = arith.constant 0 : i32
    %c0_i32_1 = arith.constant 0 : i32
    return %c0_i32, %c0_i32_0 : i32, i32
  }
  func.func @transform_2(%arg0: i32) -> (i32, i32) {
    %c0_i32 = arith.constant 0 : i32
    %c0_i32_0 = arith.constant 0 : i32
    %c0_i32_1 = arith.constant 0 : i32
    return %c0_i32, %c0_i32_0 : i32, i32
  }
  func.func @transform_3(%arg0: i32) -> (i32, i32) {
    %c0_i32 = arith.constant 0 : i32
    %c0_i32_0 = arith.constant 0 : i32
    return %arg0, %c0_i32 : i32, i32
  }
}

</mosaic_0001>

<bundles_post_ra>
// kernel: sphere_encoder.3
= control target key start
LH: loop header
LB: loop body
LE: loop exit
PB: predicated region body
PF: predicated region fallthrough
CT: control target
= control target key end

     0   :  { %s1085_s12 = smov 0   ;;  %s1266_s0 = inlined_call_operand.vmem [shape: bf16[32,768], index: 0, kind: input, shape index: {}]   ;;  %s1267_s1 = inlined_call_operand.vmem [shape: bf16[768,128], index: 1, kind: input, shape index: {}]   ;;  %s1268_s2 = inlined_call_operand.vmem [shape: bf16[32,128], index: 2, kind: output, shape index: {0}]   ;;  %s1269_s3 = inlined_call_operand.vmem [shape: f32[2,8,128], index: 3, kind: output, shape index: {1}]  }
   0x1 LB: > { %s1091_s13 = sadd.s32 4294967295, %s1063_s12   ;;  %p854_p0 = scmp.ge.s32.totalorder %s1063_s12, 1  ;;  %s1063_s12 = sphi %s1085_s12, %s14_s12  }
   0x2   : > { %p142_p1 = scmp.lt.s32.totalorder %s1063_s12, 3 }
   0x4   : > { %p143_p2 = pnand %p854_p0, %p142_p1 }
   0x5   : > { %v1000_v0 = vld [vmem:[%s1267_s1 + $0x40] sm:$0xff] (!%p143_p2)   ;;  %v1004_v4 = vld [vmem:[%s1267_s1 + $0x48] sm:$0xff] (!%p143_p2)   ;;  %v1008_v8 = vld [vmem:[%s1267_s1 + $0x50] sm:$0xff] (!%p143_p2)   ;;  %s855_s19 = sshll.u32 (!%p143_p2), %s1091_s13, 1  ;;  %p184_p4 = scmp.lt.s32.totalorder (!%p143_p2), %s1091_s13, 1  ;;  %vm758_vm0 = vcmask (!%p143_p2), 1040384  }
   0x6   : > { %146 = sbr.rel (%p143_p2) target bundleno = 309 (0x135), region = 28  ;;  %v1001_v1 = vld [vmem:[%s1267_s1 + $0xc0] sm:$0xff] (!%p143_p2)   ;;  %925 = vmatprep.subr.bf16.mxu0 (!%p143_p2), %v1000_v0  ;;  %v1005_v5 = vld [vmem:[%s1267_s1 + $0xc8] sm:$0xff] (!%p143_p2)   ;;  %v1009_v9 = vld [vmem:[%s1267_s1 + $0xd0] sm:$0xff] (!%p143_p2)   ;;  %p172_p3 = scmp.lt.s32.totalorder (!%p143_p2), %s855_s19, 3  ;;  %vm760_vm1 = vcmask (!%p143_p2), 1041408  }
   0x7   : > { %v1002_v2 = vld [vmem:[%s1267_s1] sm:$0xff] (!%p143_p2)   ;;  %947 = vmatprep.subr.bf16.mxu1 (!%p143_p2), %v1001_v1  ;;  %v1006_v6 = vld [vmem:[%s1267_s1 + $0x8] sm:$0xff] (!%p143_p2)   ;;  %v1010_v10 = vld [vmem:[%s1267_s1 + $0x10] sm:$0xff] (!%p143_p2)  }
   0x8   : > { %v1003_v3 = vld [vmem:[%s1267_s1 + $0x80] sm:$0xff] (!%p143_p2)   ;;  %926 = vmatpush3.bf16.msra.mxu0 (!%p143_p2), %v1002_v2  ;;  %v1007_v7 = vld [vmem:[%s1267_s1 + $0x88] sm:$0xff] (!%p143_p2)   ;;  %v1011_v11 = vld [vmem:[%s1267_s1 + $0x90] sm:$0xff] (!%p143_p2)  }
   0x9   : > { %948 = vmatpush3.bf16.msra.mxu1 (!%p143_p2), %v1003_v3  ;;  %927 = vmatprep.subr.bf16.mxu0 (!%p143_p2), %v1004_v4  ;;  %v1012_v12 = vld [vmem:[%s1267_s1 + $0x58] sm:$0xff] (!%p143_p2)   ;;  %v1016_v16 = vld [vmem:[%s1267_s1 + $0x60] sm:$0xff] (!%p143_p2)   ;;  %v1020_v20 = vld [vmem:[%s1267_s1 + $0x68] sm:$0xff] (!%p143_p2)  }
   0xa   : > { %949 = vmatprep.subr.bf16.mxu1 (!%p143_p2), %v1005_v5  ;;  %v1013_v13 = vld [vmem:[%s1267_s1 + $0xd8] sm:$0xff] (!%p143_p2)   ;;  %v1017_v17 = vld [vmem:[%s1267_s1 + $0xe0] sm:$0xff] (!%p143_p2)   ;;  %v1021_v21 = vld [vmem:[%s1267_s1 + $0xe8] sm:$0xff] (!%p143_p2)  }
   0xb   : > { %v1014_v14 = vld [vmem:[%s1267_s1 + $0x18] sm:$0xff] (!%p143_p2)   ;;  %v1018_v18 = vld [vmem:[%s1267_s1 + $0x20] sm:$0xff] (!%p143_p2)   ;;  %v1022_v22 = vld [vmem:[%s1267_s1 + $0x28] sm:$0xff] (!%p143_p2)  }
   0xc   : > { %928 = vmatpush3.bf16.msra.mxu0 (!%p143_p2), %v1006_v6  ;;  %v1015_v15 = vld [vmem:[%s1267_s1 + $0x98] sm:$0xff] (!%p143_p2)   ;;  %v1019_v19 = vld [vmem:[%s1267_s1 + $0xa0] sm:$0xff] (!%p143_p2)   ;;  %v1023_v23 = vld [vmem:[%s1267_s1 + $0xa8] sm:$0xff] (!%p143_p2)  }
   0xd   : > { %950 = vmatpush3.bf16.msra.mxu1 %v1007_v7  ;;  %929 = vmatprep.subr.bf16.mxu0 %v1008_v8  ;;  %s1271_s19 = smov (!%p172_p3, %s855_s19), 3  ;;  %v1024_v24 = vld [vmem:[%s1267_s1 + $0x70] sm:$0xff]   ;;  %v1028_v28 = vld [vmem:[%s1267_s1 + $0x78] sm:$0xff]   ;;  %v1038_v36 = vld [vmem:[%s1267_s1 + $0x140] sm:$0xff]   ;;  %s1273_s13 = smov (!%p184_p4, %s1091_s13), 1 }
   0xe   : > { %951 = vmatprep.subr.bf16.mxu1 %v1009_v9  ;;  %v1025_v25 = vld [vmem:[%s1267_s1 + $0xf0] sm:$0xff]   ;;  %s991_s17 = smul.u32 24, %s1271_s19  ;;  %v1029_v29 = vld [vmem:[%s1267_s1 + $0xf8] sm:$0xff]   ;;  %v1039_v37 = vld [vmem:[%s1267_s1 + $0x100] sm:$0xff]  }
   0xf   : > { %v1026_v26 = vld [vmem:[%s1267_s1 + $0x30] sm:$0xff]   ;;  %v1030_v30 = vld [vmem:[%s1267_s1 + $0x38] sm:$0xff]   ;;  %v1040_v38 = vld [vmem:[%s1267_s1 + $0x148] sm:$0xff]  }
  0x10   : > { %930 = vmatpush3.bf16.msra.mxu0 %v1010_v10  ;;  %v1027_v27 = vld [vmem:[%s1267_s1 + $0xb0] sm:$0xff]   ;;  %s1192_s29 = scalar_lea.vmem %s1266_s0, %s991_s17  ;;  %v1031_v31 = vld [vmem:[%s1267_s1 + $0xb8] sm:$0xff]   ;;  %v1041_v39 = vld [vmem:[%s1267_s1 + $0x108] sm:$0xff]  }
  0x11   : > { %952 = vmatpush3.bf16.msra.mxu1 %v1011_v11  ;;  %931 = vmatprep.subr.bf16.mxu0 %v1012_v12  ;;  %v1032_v32 = vld [vmem:[%s1192_s29] ss:$24 sps:$4 sm:$0xff]   ;;  %v1034_v33 = vld [vmem:[%s1192_s29 + $0x4] ss:$24 sps:$4 sm:$0xff]   ;;  %v1042_v40 = vld [vmem:[%s1267_s1 + $0x150] sm:$0xff]  }
  0x12   : > { %953 = vmatprep.subr.bf16.mxu1 %v1013_v13  ;;  %v1035_v34 = vld [vmem:[%s1192_s29 + $0x8] ss:$24 sps:$4 sm:$0xff]   ;;  %v1037_v35 = vld [vmem:[%s1192_s29 + $0xc] ss:$24 sps:$4 sm:$0xff]   ;;  %641 = vmatprep.mubr.bf16.mxu0 %v1034_v33  ;;  %v1043_v41 = vld [vmem:[%s1267_s1 + $0x110] sm:$0xff]  }
  0x13   : > { %682 = vmatprep.mubr.bf16.mxu1 %v1037_v35  ;;  %v1044_v42 = vld [vmem:[%s1267_s1 + $0x158] sm:$0xff]   ;;  %v1046_v44 = vld [vmem:[%s1267_s1 + $0x160] sm:$0xff]   ;;  %v1048_v46 = vld [vmem:[%s1267_s1 + $0x168] sm:$0xff]  }
  0x14   : > { %932 = vmatpush3.bf16.msra.mxu0 %v1014_v14  ;;  %v1045_v43 = vld [vmem:[%s1267_s1 + $0x118] sm:$0xff]   ;;  %v1047_v45 = vld [vmem:[%s1267_s1 + $0x120] sm:$0xff]   ;;  %v1056_v47 = vld [vmem:[%s1192_s29 + $0x14] ss:$24 sps:$4 sm:$0xff]  }
  0x15   : > { %954 = vmatpush3.bf16.msra.mxu1 %v1015_v15  ;;  %933 = vmatprep.subr.bf16.mxu0 %v1016_v16  ;;  %v1049_v48 = vld [vmem:[%s1267_s1 + $0x128] sm:$0xff]   ;;  %v1050_v49 = vld [vmem:[%s1267_s1 + $0x170] sm:$0xff]   ;;  %v1052_v51 = vld [vmem:[%s1267_s1 + $0x178] sm:$0xff]  }
  0x16   : > { %955 = vmatprep.subr.bf16.mxu1 %v1017_v17  ;;  %v1051_v50 = vld [vmem:[%s1267_s1 + $0x130] sm:$0xff]   ;;  %v1053_v52 = vld [vmem:[%s1267_s1 + $0x138] sm:$0xff]  }
  0x17   : > { %v1054_v53 = vld [vmem:[%s1192_s29 + $0x10] ss:$24 sps:$4 sm:$0xff]   ;;  %s858_s29 = sshll.u32 %s1271_s19, 2  ;;  %s859_s19 = sshll.u32 %s1273_s13, 3 }
  0x18   : > { %934 = vmatpush3.bf16.msra.mxu0 %v1018_v18  ;;  %s182_s21 = scalar_lea.vmem %s1268_s2, %s858_s29  ;;  %s187_s24 = scalar_lea.vmem %s1269_s3, %s859_s19 }
  0x19   : > { %956 = vmatpush3.bf16.msra.mxu1 %v1019_v19  ;;  %935 = vmatprep.subr.bf16.mxu0 %v1020_v20 }
  0x1a   : > { %957 = vmatprep.subr.bf16.mxu1 %v1021_v21 }
  0x1c   : > { %936 = vmatpush3.bf16.msra.mxu0 %v1022_v22 }
  0x1d   : > { %958 = vmatpush3.bf16.msra.mxu1 %v1023_v23  ;;  %937 = vmatprep.subr.bf16.mxu0 %v1024_v24 }
  0x1e   : > { %959 = vmatprep.subr.bf16.mxu1 %v1025_v25 }
  0x20   : > { %938 = vmatpush3.bf16.msra.mxu0 %v1026_v26 }
  0x21   : > { %960 = vmatpush3.bf16.msra.mxu1 %v1027_v27  ;;  %939 = vmatprep.subr.bf16.mxu0 %v1028_v28 }
  0x22   : > { %961 = vmatprep.subr.bf16.mxu1 %v1029_v29 }
  0x24   : > { %940 = vmatpush3.bf16.msra.mxu0 %v1030_v30 }
  0x25   : > { %962 = vmatpush3.bf16.msra.mxu1 %v1031_v31  ;;  %969 = vmatprep.subr.bf16.mxu0 %v1038_v36 }
  0x27   : > { %642 = vmatmul.mubr.bf16.vlgmr.msra.gmra.mrb[0].mxu0 %v1032_v32 }
  0x28   : > { %683 = vmatmul.mubr.bf16.vlgmr.msra.gmra.mrb[0].mxu1 %v1035_v34  ;;  %970 = vmatpush3.bf16.msra.mxu0 %v1039_v37 }
  0x29   : > { %971 = vmatprep.subr.bf16.mxu0 %v1040_v38  ;;  %723 = vmatprep.mubr.bf16.mxu0 %v1056_v47 }
  0x2c   : > { %972 = vmatpush3.bf16.msra.mxu0 %v1041_v39 }
  0x2d   : > { %973 = vmatprep.subr.bf16.mxu0 %v1042_v40 }
  0x30   : > { %974 = vmatpush3.bf16.msra.mxu0 %v1043_v41 }
  0x31   : > { %975 = vmatprep.subr.bf16.mxu0 %v1044_v42 }
  0x34   : > { %976 = vmatpush3.bf16.msra.mxu0 %v1045_v43 }
  0x35   : > { %977 = vmatprep.subr.bf16.mxu0 %v1046_v44 }
  0x38   : > { %978 = vmatpush3.bf16.msra.mxu0 %v1047_v45 }
  0x39   : > { %979 = vmatprep.subr.bf16.mxu0 %v1048_v46 }
  0x3c   : > { %980 = vmatpush3.bf16.msra.mxu0 %v1049_v48 }
  0x3d   : > { %981 = vmatprep.subr.bf16.mxu0 %v1050_v49 }
  0x40   : > { %982 = vmatpush3.bf16.msra.mxu0 %v1051_v50 }
  0x41   : > { %983 = vmatprep.subr.bf16.mxu0 %v1052_v51 }
  0x44   : > { %984 = vmatpush3.bf16.msra.mxu0 %v1053_v52 }
  0x47   : > { %724 = vmatmul.mubr.bf16.vlgmr.msra.gmra.mrb[4].mxu0 %v1054_v53 }
  0xfa   : > { %v941_v54 = vpop.f32.mrb[0].mxu0 }
  0xfb   : > { %v963_v55 = vpop.f32.mrb[0].mxu1  ;;  %v942_v56 = vpop.f32.mrb[1].mxu0 }
  0xfc   : > { %v943_v57 = vadd.f32 %v942_v56, %v941_v54  ;;  %v964_v58 = vpop.f32.mrb[1].mxu1  ;;  %v944_v59 = vpop.f32.mrb[2].mxu0 }
  0xfd   : > { %v965_v60 = vadd.f32 %v964_v58, %v963_v55  ;;  %v966_v61 = vpop.f32.mrb[2].mxu1  ;;  %v945_v62 = vpop.f32.mrb[3].mxu0 }
  0xfe   : > { %v946_v63 = vadd.f32 %v945_v62, %v944_v59  ;;  %v967_v0 = vpop.f32.mrb[3].mxu1 }
  0xff   : > { %v685_v1 = vadd.f32 %v965_v60, %v943_v57  ;;  %v968_v2 = vadd.f32 %v967_v0, %v966_v61 }
 0x101   : > { %v688_v3 = vadd.f32 %v968_v2, %v946_v63 }
 0x11a   : > { %v985_v4 = vpop.f32.mrb[4].mxu0 }
 0x11b   : > { %v986_v5 = vpop.f32.mrb[5].mxu0 }
 0x11c   : > { %v987_v6 = vadd.f32 %v986_v5, %v985_v4  ;;  %v988_v7 = vpop.f32.mrb[6].mxu0 }
 0x11d   : > { %v989_v8 = vpop.f32.mrb[7].mxu0 }
 0x11e   : > { %v726_v9 = vadd.f32 %v987_v6, %v685_v1  ;;  %v990_v10 = vadd.f32 %v989_v8, %v988_v7 }
 0x120   : > { %v729_v11 = vadd.f32 %v990_v10, %v688_v3  ;;  %v749_v12 = vmul.f32 %v726_v9, %v726_v9 }
 0x122   : > { %v923_v13 = vpack.c.bf16 %v729_v11, %v726_v9  ;;  %v742_v14 = vadd.f32 %v729_v11, %v726_v9  ;;  %v750_v15 = vmul.f32 %v729_v11, %v729_v11 }
 0x124   : > { %924 = vst [vmem:[%s182_s21] sm:$0xff] %v923_v13   ;;  %v743_v16 = vrot.slane %v742_v14, 4  ;;  %v751_v17 = vadd.f32 %v750_v15, %v749_v12 }
 0x126   : > { %v744_v18 = vadd.f32 %v743_v16, %v742_v14  ;;  %v752_v19 = vrot.slane %v751_v17, 4 }
 0x128   : > { %v745_v20 = vrot.slane %v744_v18, 2  ;;  %v753_v21 = vadd.f32 %v752_v19, %v751_v17 }
 0x12a   : > { %v746_v22 = vadd.f32 %v745_v20, %v744_v18  ;;  %v754_v23 = vrot.slane %v753_v21, 2 }
 0x12c   : > { %v747_v24 = vrot.slane %v746_v22, 1  ;;  %v755_v25 = vadd.f32 %v754_v23, %v753_v21 }
 0x12e   : > { %v756_v26 = vrot.slane %v755_v25, 1  ;;  %v748_v27 = vadd.f32 %v747_v24, %v746_v22 }
 0x130   : > { %v757_v28 = vadd.f32 %v756_v26, %v755_v25 }
 0x132   : > { %v759_v29 = vsel %vm758_vm0, %v748_v27, %v757_v28 }
 0x133   : > { %v761_v30 = vsel %vm760_vm1, %v759_v29, 0.0 }
 0x134   : > { %762 = vst [vmem:[%s187_s24] sm:$0xff] %v761_v30 }
 0x135 PF: > { %s14_s12 = sadd.s32 1, %s1063_s12  }
 0x136   : > { %p11_p5 = scmp.ge.s32.totalorder %s14_s12, 4  }
 0x138   :  { %13 = sbr.rel (!%p11_p5) target bundleno = 1 (0x1), region = 70 }

// kernel: tile.13
= control target key start
LH: loop header
LB: loop body
LE: loop exit
PB: predicated region body
PF: predicated region fallthrough
CT: control target
= control target key end

     0   :  { %s28_s0 = inlined_call_operand.vmem [shape: f32[8], index: 0, kind: input, shape index: {}]   ;;  %s29_s1 = inlined_call_operand.vmem [shape: f32[16,8], index: 1, kind: output, shape index: {}]  }
   0x1   :  { %v4_v0 = vld [vmem:[%s28_s0] ss:$0 sm:$0xff] }
   0x2   :  { %5 = vst [vmem:[%s29_s1] sm:$0xff] %v4_v0  ;;  %8 = vst [vmem:[%s29_s1 + $0x8] sm:$0xff] %v4_v0 }

// kernel: tile.14
= control target key start
LH: loop header
LB: loop body
LE: loop exit
PB: predicated region body
PF: predicated region fallthrough
CT: control target
= control target key end

     0   :  { %s131_s10 = smov 120   ;;  %s132_s11 = smov 104   ;;  %vm3_vm0 = vcmask 64512   ;;  %vm9_vm1 = vcmask 1048512   ;;  %vm15_vm2 = vcmask 982912   ;;  %vm21_vm3 = vcmask 917312   ;;  %s207_s0 = inlined_call_operand.vmem [shape: f32[16,8], index: 0, kind: input, shape index: {}]   ;;  %s208_s1 = inlined_call_operand.vmem [shape: f32[1,128], index: 1, kind: output, shape index: {}]  }
   0x1   :  { %v101_v0 = vld [vmem:[%s207_s0 + $0xf] sm:$0x1]   ;;  %v103_v1 = vld [vmem:[%s207_s0 + $0xd] sm:$0x1]   ;;  %v102_v2 = vld [vmem:[%s207_s0 + $0xe] sm:$0x1]  }
   0x2   :  { %7 = vrot.lane.b32.xlu0 %v101_v0, %s131_s10  ;;  %19 = vrot.lane.b32.xlu1 %v103_v1, %s132_s11  ;;  %v104_v3 = vld [vmem:[%s207_s0 + $0xc] sm:$0x1]   ;;  %s133_s16 = smov 112   ;;  %s134_s17 = smov 96   ;;  %v105_v4 = vld [vmem:[%s207_s0 + $0xb] sm:$0x1]  }
   0x3   :  { %v106_v5 = vld [vmem:[%s207_s0 + $0xa] sm:$0x1]   ;;  %v2_v6 = vld [vmem:[%s207_s0] sm:$0x1]   ;;  %s135_s24 = smov 88   ;;  %s136_s25 = smov 80  }
   0x4   :  { %4 = vst.msk [vmem:[#allocation0] sm:$0x1] %vm3_vm0, %v2_v6   ;;  %v107_v7 = vld [vmem:[%s207_s0 + $0x9] sm:$0x1]   ;;  %v108_v8 = vld [vmem:[%s207_s0 + $0x8] sm:$0x1]  }
   0x5   :  { %s137_s30 = smov 72   ;;  %s138_s2 = smov 64   ;;  %v109_v9 = vld [vmem:[%s207_s0 + $0x7] sm:$0x1]   ;;  %v110_v10 = vld [vmem:[%s207_s0 + $0x6] sm:$0x1]  }
   0x6   :  { %13 = vrot.lane.b32.xlu0 %v102_v2, %s133_s16  ;;  %25 = vrot.lane.b32.xlu1 %v104_v3, %s134_s17  ;;  %s139_s7 = smov 56   ;;  %s140_s8 = smov 48   ;;  %v111_v11 = vld [vmem:[%s207_s0 + $0x5] sm:$0x1]   ;;  %v112_v12 = vld [vmem:[%s207_s0 + $0x4] sm:$0x1]  }
   0x7   :  { %s141_s13 = smov 40   ;;  %s142_s14 = smov 32   ;;  %v113_v13 = vld [vmem:[%s207_s0 + $0x3] sm:$0x1]   ;;  %v114_v14 = vld [vmem:[%s207_s0 + $0x2] sm:$0x1]  }
   0x8   :  { %s143_s19 = smov 24   ;;  %s144_s20 = smov 16   ;;  %v115_v15 = vld [vmem:[%s207_s0 + $0x1] sm:$0x1]   ;;  %vm27_vm4 = vcmask 851712   ;;  %vm33_vm5 = vcmask 786112  }
   0x9   :  { %s145_s0 = smov 8   ;;  %vm39_vm6 = vcmask 720512   ;;  %vm45_vm7 = vcmask 654912   ;;  %vm51_vm8 = vcmask 589312   ;;  %vm57_vm9 = vcmask 523712  }
   0xa   :  { %31 = vrot.lane.b32.xlu0 %v105_v4, %s135_s24  ;;  %37 = vrot.lane.b32.xlu1 %v106_v5, %s136_s25  ;;  %vm63_vm10 = vcmask 458112   ;;  %vm69_vm11 = vcmask 392512   ;;  %vm75_vm12 = vcmask 326912   ;;  %vm81_vm13 = vcmask 261312  }
   0xb   :  { %vm87_vm14 = vcmask 195712   ;;  %vm93_vm15 = vcmask 130112  }
   0xe   :  { %43 = vrot.lane.b32.xlu0 %v107_v7, %s137_s30  ;;  %49 = vrot.lane.b32.xlu1 %v108_v8, %s138_s2 }
  0x12   :  { %55 = vrot.lane.b32.xlu0 %v109_v9, %s139_s7  ;;  %61 = vrot.lane.b32.xlu1 %v110_v10, %s140_s8 }
  0x16   :  { %67 = vrot.lane.b32.xlu0 %v111_v11, %s141_s13  ;;  %73 = vrot.lane.b32.xlu1 %v112_v12, %s142_s14 }
  0x1a   :  { %79 = vrot.lane.b32.xlu0 %v113_v13, %s143_s19  ;;  %85 = vrot.lane.b32.xlu1 %v114_v14, %s144_s20 }
  0x1e   :  { %91 = vrot.lane.b32.xlu0 %v115_v15, %s145_s0 }
  0x74   :  { %v8_v16 = vpop.permute.xlu0 %7   ;;  %v20_v17 = vpop.permute.xlu1 %19  }
  0x75   :  { %10 = vst.msk [vmem:[#allocation0] sm:$0x1] %vm9_vm1, %v8_v16  }
  0x78   :  { %v14_v18 = vpop.permute.xlu0 %13   ;;  %v26_v19 = vpop.permute.xlu1 %25  }
  0x79   :  { %16 = vst.msk [vmem:[#allocation0] sm:$0x1] %vm15_vm2, %v14_v18  }
  0x7a   :  { %22 = vst.msk [vmem:[#allocation0] sm:$0x1] %vm21_vm3, %v20_v17  }
  0x7b   :  { %28 = vst.msk [vmem:[#allocation0] sm:$0x1] %vm27_vm4, %v26_v19  }
  0x7c   :  { %v32_v20 = vpop.permute.xlu0 %31   ;;  %v38_v21 = vpop.permute.xlu1 %37  }
  0x7d   :  { %34 = vst.msk [vmem:[#allocation0] sm:$0x1] %vm33_vm5, %v32_v20  }
  0x7e   :  { %40 = vst.msk [vmem:[#allocation0] sm:$0x1] %vm39_vm6, %v38_v21  }
  0x80   :  { %v44_v22 = vpop.permute.xlu0 %43   ;;  %v50_v23 = vpop.permute.xlu1 %49  }
  0x81   :  { %46 = vst.msk [vmem:[#allocation0] sm:$0x1] %vm45_vm7, %v44_v22  }
  0x82   :  { %52 = vst.msk [vmem:[#allocation0] sm:$0x1] %vm51_vm8, %v50_v23  }
  0x84   :  { %v56_v24 = vpop.permute.xlu0 %55   ;;  %v62_v25 = vpop.permute.xlu1 %61  }
  0x85   :  { %58 = vst.msk [vmem:[#allocation0] sm:$0x1] %vm57_vm9, %v56_v24  }
  0x86   :  { %64 = vst.msk [vmem:[#allocation0] sm:$0x1] %vm63_vm10, %v62_v25  }
  0x88   :  { %v68_v26 = vpop.permute.xlu0 %67   ;;  %v74_v27 = vpop.permute.xlu1 %73  }
  0x89   :  { %70 = vst.msk [vmem:[#allocation0] sm:$0x1] %vm69_vm11, %v68_v26  }
  0x8a   :  { %76 = vst.msk [vmem:[#allocation0] sm:$0x1] %vm75_vm12, %v74_v27  }
  0x8c   :  { %v80_v28 = vpop.permute.xlu0 %79   ;;  %v86_v29 = vpop.permute.xlu1 %85  }
  0x8d   :  { %82 = vst.msk [vmem:[#allocation0] sm:$0x1] %vm81_vm13, %v80_v28  }
  0x8e   :  { %88 = vst.msk [vmem:[#allocation0] sm:$0x1] %vm87_vm14, %v86_v29  }
  0x90   :  { %v92_v30 = vpop.permute.xlu0 %91  }
  0x91   :  { %94 = vst.msk [vmem:[#allocation0] sm:$0x1] %vm93_vm15, %v92_v30  }
  0x98   :  { %v98_v31 = vld [vmem:[#allocation0] sm:$0x1] }
  0x99   :  { %100 = vst [vmem:[%s208_s1] sm:$0x1] %v98_v31 }

// kernel: sphere_encoder.5
= control target key start
LH: loop header
LB: loop body
LE: loop exit
PB: predicated region body
PF: predicated region fallthrough
CT: control target
= control target key end

     0   :  { %s309_s12 = smov 0   ;;  %s332_s0 = inlined_call_operand.vmem [shape: bf16[32,128], index: 0, kind: input, shape index: {}]   ;;  %s333_s1 = inlined_call_operand.vmem [shape: f32[1,128], index: 1, kind: input, shape index: {}]   ;;  %s334_s2 = inlined_call_operand.vmem [shape: f32[1,128], index: 2, kind: input, shape index: {}]   ;;  %s335_s3 = inlined_call_operand.vmem [shape: f32[32,128], index: 3, kind: output, shape index: {}]  }
   0x1 LB: > { %s256_s13 = sadd.s32 4294967295, %s287_s12   ;;  %p260_p0 = scmp.ge.s32.totalorder %s287_s12, 1  ;;  %s287_s12 = sphi %s309_s12, %s13_s12  }
   0x2   : > { %p138_p1 = scmp.lt.s32.totalorder %s287_s12, 3 }
   0x4   : > { %p139_p2 = pnand %p260_p0, %p138_p1 }
   0x5   : > { %s261_s14 = sshll.u32 (!%p139_p2), %s256_s13, 1  ;;  %v265_v1 = vld [vmem:[%s333_s1] ss:$0 sm:$0xff] (!%p139_p2) }
   0x6   : > { %142 = sbr.rel (%p139_p2) target bundleno = 26 (0x1a), region = 32  ;;  %p163_p3 = scmp.lt.s32.totalorder (!%p139_p2), %s261_s14, 3  ;;  %v266_v4 = vld [vmem:[%s334_s2] ss:$0 sm:$0xff] (!%p139_p2) }
   0xd   : > { %s337_s14 = smov (!%p163_p3, %s261_s14), 3 }
   0xe   : > { %s262_s15 = sshll.u32 %s337_s14, 2  ;;  %s264_s23 = sshll.u32 %s337_s14, 3 }
   0xf   : > { %s166_s18 = scalar_lea.vmem %s332_s0, %s262_s15  ;;  %s172_s26 = scalar_lea.vmem %s335_s3, %s264_s23 }
  0x10   : > { %v270_v0 = vld [vmem:[%s166_s18] sm:$0xff]  }
  0x11   : > { %v271_v2 = vunpack.c.l.bf16 %v270_v0  ;;  %v272_v3 = vunpack.c.h.bf16 %v270_v0 }
  0x13   : > { %v185_v5 = vmul.f32 %v271_v2, %v265_v1  ;;  %v186_v6 = vmul.f32 %v272_v3, %v265_v1 }
  0x15   : > { %v194_v7 = vadd.f32 %v266_v4, %v185_v5  ;;  %v195_v8 = vadd.f32 %v266_v4, %v186_v6 }
  0x17   : > { %v196_v9 = vmax.f32 %v194_v7, 0.0  ;;  %v197_v10 = vmax.f32 %v195_v8, 0.0 }
  0x19   : > { %198 = vst [vmem:[%s172_s26] sm:$0xff] %v196_v9  ;;  %199 = vst [vmem:[%s172_s26 + $0x8] sm:$0xff] %v197_v10 }
  0x1a PF: > { %s13_s12 = sadd.s32 1, %s287_s12  }
  0x1b   : > { %p10_p4 = scmp.ge.s32.totalorder %s13_s12, 4  }
  0x1d   :  { %12 = sbr.rel (!%p10_p4) target bundleno = 1 (0x1), region = 62 }

// kernel: sphere_encoder.4
= control target key start
LH: loop header
LB: loop body
LE: loop exit
PB: predicated region body
PF: predicated region fallthrough
CT: control target
= control target key end

     0   :  { %s1565_s12 = smov 0   ;;  %s1846_s0 = inlined_call_operand.vmem [shape: bf16[32,1280], index: 0, kind: input, shape index: {}]   ;;  %s1847_s1 = inlined_call_operand.vmem [shape: bf16[1280,128], index: 1, kind: input, shape index: {}]   ;;  %s1848_s2 = inlined_call_operand.vmem [shape: bf16[32,128], index: 2, kind: output, shape index: {0}]   ;;  %s1849_s3 = inlined_call_operand.vmem [shape: f32[2,8,128], index: 3, kind: output, shape index: {1}]  }
   0x1 LB: > { %s1571_s13 = sadd.s32 4294967295, %s1543_s12   ;;  %p1216_p0 = scmp.ge.s32.totalorder %s1543_s12, 1  ;;  %s1543_s12 = sphi %s1565_s12, %s14_s12  }
   0x2   : > { %p142_p1 = scmp.lt.s32.totalorder %s1543_s12, 3 }
   0x4   : > { %p143_p2 = pnand %p1216_p0, %p142_p1 }
   0x5   : > { %v1442_v0 = vld [vmem:[%s1847_s1 + $0x40] sm:$0xff] (!%p143_p2)   ;;  %v1446_v4 = vld [vmem:[%s1847_s1 + $0x48] sm:$0xff] (!%p143_p2)   ;;  %v1450_v8 = vld [vmem:[%s1847_s1 + $0x50] sm:$0xff] (!%p143_p2)   ;;  %s1217_s19 = sshll.u32 (!%p143_p2), %s1571_s13, 1  ;;  %p184_p4 = scmp.lt.s32.totalorder (!%p143_p2), %s1571_s13, 1  ;;  %vm1120_vm0 = vcmask (!%p143_p2), 1040384  }
   0x6   : > { %146 = sbr.rel (%p143_p2) target bundleno = 341 (0x155), region = 28  ;;  %v1443_v1 = vld [vmem:[%s1847_s1 + $0xc0] sm:$0xff] (!%p143_p2)   ;;  %1323 = vmatprep.subr.bf16.mxu0 (!%p143_p2), %v1442_v0  ;;  %v1447_v5 = vld [vmem:[%s1847_s1 + $0xc8] sm:$0xff] (!%p143_p2)   ;;  %v1451_v9 = vld [vmem:[%s1847_s1 + $0xd0] sm:$0xff] (!%p143_p2)   ;;  %p172_p3 = scmp.lt.s32.totalorder (!%p143_p2), %s1217_s19, 3  ;;  %vm1122_vm1 = vcmask (!%p143_p2), 1041408  }
   0x7   : > { %v1444_v2 = vld [vmem:[%s1847_s1] sm:$0xff] (!%p143_p2)   ;;  %1345 = vmatprep.subr.bf16.mxu1 (!%p143_p2), %v1443_v1  ;;  %v1448_v6 = vld [vmem:[%s1847_s1 + $0x8] sm:$0xff] (!%p143_p2)   ;;  %v1452_v10 = vld [vmem:[%s1847_s1 + $0x10] sm:$0xff] (!%p143_p2)  }
   0x8   : > { %v1445_v3 = vld [vmem:[%s1847_s1 + $0x80] sm:$0xff] (!%p143_p2)   ;;  %1324 = vmatpush3.bf16.msra.mxu0 (!%p143_p2), %v1444_v2  ;;  %v1449_v7 = vld [vmem:[%s1847_s1 + $0x88] sm:$0xff] (!%p143_p2)   ;;  %v1453_v11 = vld [vmem:[%s1847_s1 + $0x90] sm:$0xff] (!%p143_p2)  }
   0x9   : > { %1346 = vmatpush3.bf16.msra.mxu1 (!%p143_p2), %v1445_v3  ;;  %1325 = vmatprep.subr.bf16.mxu0 (!%p143_p2), %v1446_v4  ;;  %v1454_v12 = vld [vmem:[%s1847_s1 + $0x58] sm:$0xff] (!%p143_p2)   ;;  %v1458_v16 = vld [vmem:[%s1847_s1 + $0x60] sm:$0xff] (!%p143_p2)   ;;  %v1462_v20 = vld [vmem:[%s1847_s1 + $0x68] sm:$0xff] (!%p143_p2)  }
   0xa   : > { %1347 = vmatprep.subr.bf16.mxu1 (!%p143_p2), %v1447_v5  ;;  %v1455_v13 = vld [vmem:[%s1847_s1 + $0xd8] sm:$0xff] (!%p143_p2)   ;;  %v1459_v17 = vld [vmem:[%s1847_s1 + $0xe0] sm:$0xff] (!%p143_p2)   ;;  %v1463_v21 = vld [vmem:[%s1847_s1 + $0xe8] sm:$0xff] (!%p143_p2)  }
   0xb   : > { %v1456_v14 = vld [vmem:[%s1847_s1 + $0x18] sm:$0xff] (!%p143_p2)   ;;  %v1460_v18 = vld [vmem:[%s1847_s1 + $0x20] sm:$0xff] (!%p143_p2)   ;;  %v1464_v22 = vld [vmem:[%s1847_s1 + $0x28] sm:$0xff] (!%p143_p2)  }
   0xc   : > { %1326 = vmatpush3.bf16.msra.mxu0 (!%p143_p2), %v1448_v6  ;;  %v1457_v15 = vld [vmem:[%s1847_s1 + $0x98] sm:$0xff] (!%p143_p2)   ;;  %v1461_v19 = vld [vmem:[%s1847_s1 + $0xa0] sm:$0xff] (!%p143_p2)   ;;  %v1465_v23 = vld [vmem:[%s1847_s1 + $0xa8] sm:$0xff] (!%p143_p2)  }
   0xd   : > { %1348 = vmatpush3.bf16.msra.mxu1 %v1449_v7  ;;  %1327 = vmatprep.subr.bf16.mxu0 %v1450_v8  ;;  %s1851_s19 = smov (!%p172_p3, %s1217_s19), 3  ;;  %v1466_v24 = vld [vmem:[%s1847_s1 + $0x70] sm:$0xff]   ;;  %v1470_v28 = vld [vmem:[%s1847_s1 + $0x78] sm:$0xff]   ;;  %v1480_v36 = vld [vmem:[%s1847_s1 + $0x140] sm:$0xff]   ;;  %s1853_s13 = smov (!%p184_p4, %s1571_s13), 1 }
   0xe   : > { %1349 = vmatprep.subr.bf16.mxu1 %v1451_v9  ;;  %v1467_v25 = vld [vmem:[%s1847_s1 + $0xf0] sm:$0xff]   ;;  %s1433_s17 = smul.u32 40, %s1851_s19  ;;  %v1471_v29 = vld [vmem:[%s1847_s1 + $0xf8] sm:$0xff]   ;;  %v1481_v37 = vld [vmem:[%s1847_s1 + $0x100] sm:$0xff]  }
   0xf   : > { %v1468_v26 = vld [vmem:[%s1847_s1 + $0x30] sm:$0xff]   ;;  %v1472_v30 = vld [vmem:[%s1847_s1 + $0x38] sm:$0xff]   ;;  %v1482_v38 = vld [vmem:[%s1847_s1 + $0x1c0] sm:$0xff]  }
  0x10   : > { %1328 = vmatpush3.bf16.msra.mxu0 %v1452_v10  ;;  %v1469_v27 = vld [vmem:[%s1847_s1 + $0xb0] sm:$0xff]   ;;  %s1672_s29 = scalar_lea.vmem %s1846_s0, %s1433_s17  ;;  %v1473_v31 = vld [vmem:[%s1847_s1 + $0xb8] sm:$0xff]   ;;  %v1483_v39 = vld [vmem:[%s1847_s1 + $0x180] sm:$0xff]  }
  0x11   : > { %1350 = vmatpush3.bf16.msra.mxu1 %v1453_v11  ;;  %1329 = vmatprep.subr.bf16.mxu0 %v1454_v12  ;;  %v1474_v32 = vld [vmem:[%s1672_s29] ss:$40 sps:$4 sm:$0xff]   ;;  %v1476_v33 = vld [vmem:[%s1672_s29 + $0x4] ss:$40 sps:$4 sm:$0xff]   ;;  %v1488_v44 = vld [vmem:[%s1847_s1 + $0x150] sm:$0xff]  }
  0x12   : > { %1351 = vmatprep.subr.bf16.mxu1 %v1455_v13  ;;  %v1477_v34 = vld [vmem:[%s1672_s29 + $0x8] ss:$40 sps:$4 sm:$0xff]   ;;  %v1479_v35 = vld [vmem:[%s1672_s29 + $0xc] ss:$40 sps:$4 sm:$0xff]   ;;  %921 = vmatprep.mubr.bf16.mxu0 %v1476_v33  ;;  %v1492_v48 = vld [vmem:[%s1847_s1 + $0x158] sm:$0xff]  }
  0x13   : > { %962 = vmatprep.mubr.bf16.mxu1 %v1479_v35  ;;  %v1484_v40 = vld [vmem:[%s1847_s1 + $0x148] sm:$0xff]   ;;  %v1489_v45 = vld [vmem:[%s1847_s1 + $0x110] sm:$0xff]   ;;  %v1493_v49 = vld [vmem:[%s1847_s1 + $0x118] sm:$0xff]  }
  0x14   : > { %1330 = vmatpush3.bf16.msra.mxu0 %v1456_v14  ;;  %v1485_v41 = vld [vmem:[%s1847_s1 + $0x108] sm:$0xff]   ;;  %v1490_v46 = vld [vmem:[%s1847_s1 + $0x1d0] sm:$0xff]   ;;  %v1494_v50 = vld [vmem:[%s1847_s1 + $0x1d8] sm:$0xff]  }
  0x15   : > { %1352 = vmatpush3.bf16.msra.mxu1 %v1457_v15  ;;  %1331 = vmatprep.subr.bf16.mxu0 %v1458_v16  ;;  %v1486_v42 = vld [vmem:[%s1847_s1 + $0x1c8] sm:$0xff]   ;;  %v1491_v47 = vld [vmem:[%s1847_s1 + $0x190] sm:$0xff]   ;;  %v1495_v51 = vld [vmem:[%s1847_s1 + $0x198] sm:$0xff]  }
  0x16   : > { %1353 = vmatprep.subr.bf16.mxu1 %v1459_v17  ;;  %v1487_v43 = vld [vmem:[%s1847_s1 + $0x188] sm:$0xff]   ;;  %v1496_v52 = vld [vmem:[%s1847_s1 + $0x160] sm:$0xff]   ;;  %v1504_v60 = vld [vmem:[%s1847_s1 + $0x170] sm:$0xff]  }
  0x17   : > { %v1497_v53 = vld [vmem:[%s1847_s1 + $0x120] sm:$0xff]   ;;  %v1500_v56 = vld [vmem:[%s1847_s1 + $0x168] sm:$0xff]   ;;  %v1505_v61 = vld [vmem:[%s1847_s1 + $0x130] sm:$0xff]  }
  0x18   : > { %1332 = vmatpush3.bf16.msra.mxu0 %v1460_v18  ;;  %v1498_v54 = vld [vmem:[%s1847_s1 + $0x1e0] sm:$0xff]   ;;  %v1501_v57 = vld [vmem:[%s1847_s1 + $0x128] sm:$0xff]   ;;  %v1506_v62 = vld [vmem:[%s1847_s1 + $0x1f0] sm:$0xff]  }
  0x19   : > { %1354 = vmatpush3.bf16.msra.mxu1 %v1461_v19  ;;  %1333 = vmatprep.subr.bf16.mxu0 %v1462_v20  ;;  %v1499_v55 = vld [vmem:[%s1847_s1 + $0x1a0] sm:$0xff]   ;;  %v1502_v58 = vld [vmem:[%s1847_s1 + $0x1e8] sm:$0xff]   ;;  %v1507_v63 = vld [vmem:[%s1847_s1 + $0x1b0] sm:$0xff]  }
  0x1a   : > { %1355 = vmatprep.subr.bf16.mxu1 %v1463_v21  ;;  %v1503_v59 = vld [vmem:[%s1847_s1 + $0x1a8] sm:$0xff]   ;;  %v1508_v0 = vld [vmem:[%s1847_s1 + $0x178] sm:$0xff]   ;;  %v1515_v6 = vld [vmem:[%s1847_s1 + $0x240] sm:$0xff]  }
  0x1b   : > { %v1509_v1 = vld [vmem:[%s1847_s1 + $0x138] sm:$0xff]   ;;  %v1519_v9 = vld [vmem:[%s1847_s1 + $0x200] sm:$0xff]   ;;  %v1520_v10 = vld [vmem:[%s1847_s1 + $0x248] sm:$0xff]  }
  0x1c   : > { %1334 = vmatpush3.bf16.msra.mxu0 %v1464_v22  ;;  %v1510_v2 = vld [vmem:[%s1847_s1 + $0x1f8] sm:$0xff]   ;;  %v1521_v11 = vld [vmem:[%s1847_s1 + $0x208] sm:$0xff]   ;;  %v1522_v12 = vld [vmem:[%s1847_s1 + $0x250] sm:$0xff]  }
  0x1d   : > { %1356 = vmatpush3.bf16.msra.mxu1 %v1465_v23  ;;  %1335 = vmatprep.subr.bf16.mxu0 %v1466_v24  ;;  %v1511_v3 = vld [vmem:[%s1672_s29 + $0x10] ss:$40 sps:$4 sm:$0xff]   ;;  %v1513_v4 = vld [vmem:[%s1672_s29 + $0x14] ss:$40 sps:$4 sm:$0xff]   ;;  %v1526_v16 = vld [vmem:[%s1847_s1 + $0x260] sm:$0xff]  }
  0x1e   : > { %1357 = vmatprep.subr.bf16.mxu1 %v1467_v25  ;;  %v1514_v5 = vld [vmem:[%s1847_s1 + $0x1b8] sm:$0xff]   ;;  %v1523_v13 = vld [vmem:[%s1847_s1 + $0x210] sm:$0xff]   ;;  %v1527_v17 = vld [vmem:[%s1847_s1 + $0x220] sm:$0xff]  }
  0x1f   : > { %v1516_v7 = vld [vmem:[%s1672_s29 + $0x18] ss:$40 sps:$4 sm:$0xff]   ;;  %v1518_v8 = vld [vmem:[%s1672_s29 + $0x1c] ss:$40 sps:$4 sm:$0xff]   ;;  %v1528_v18 = vld [vmem:[%s1847_s1 + $0x268] sm:$0xff]  }
  0x20   : > { %1336 = vmatpush3.bf16.msra.mxu0 %v1468_v26  ;;  %v1524_v14 = vld [vmem:[%s1847_s1 + $0x258] sm:$0xff]   ;;  %v1536_v19 = vld [vmem:[%s1672_s29 + $0x24] ss:$40 sps:$4 sm:$0xff]   ;;  %v1530_v21 = vld [vmem:[%s1847_s1 + $0x270] sm:$0xff]  }
  0x21   : > { %1358 = vmatpush3.bf16.msra.mxu1 %v1469_v27  ;;  %1337 = vmatprep.subr.bf16.mxu0 %v1470_v28  ;;  %v1525_v15 = vld [vmem:[%s1847_s1 + $0x218] sm:$0xff]   ;;  %v1529_v20 = vld [vmem:[%s1847_s1 + $0x228] sm:$0xff]   ;;  %v1531_v22 = vld [vmem:[%s1847_s1 + $0x230] sm:$0xff]  }
  0x22   : > { %1359 = vmatprep.subr.bf16.mxu1 %v1471_v29  ;;  %v1532_v23 = vld [vmem:[%s1847_s1 + $0x278] sm:$0xff]   ;;  %v1534_v25 = vld [vmem:[%s1672_s29 + $0x20] ss:$40 sps:$4 sm:$0xff]   ;;  %s1220_s29 = sshll.u32 %s1851_s19, 2  ;;  %s1221_s19 = sshll.u32 %s1853_s13, 3 }
  0x23   : > { %v1533_v24 = vld [vmem:[%s1847_s1 + $0x238] sm:$0xff]   ;;  %s182_s15 = scalar_lea.vmem %s1848_s2, %s1220_s29  ;;  %s187_s18 = scalar_lea.vmem %s1849_s3, %s1221_s19 }
  0x24   : > { %1338 = vmatpush3.bf16.msra.mxu0 %v1472_v30 }
  0x25   : > { %1360 = vmatpush3.bf16.msra.mxu1 %v1473_v31  ;;  %1367 = vmatprep.subr.bf16.mxu0 %v1480_v36 }
  0x26   : > { %1389 = vmatprep.subr.bf16.mxu1 %v1482_v38 }
  0x27   : > { %922 = vmatmul.mubr.bf16.vlgmr.msra.gmra.mrb[0].mxu0 %v1474_v32 }
  0x28   : > { %963 = vmatmul.mubr.bf16.vlgmr.msra.gmra.mrb[0].mxu1 %v1477_v34  ;;  %1368 = vmatpush3.bf16.msra.mxu0 %v1481_v37 }
  0x29   : > { %1390 = vmatpush3.bf16.msra.mxu1 %v1483_v39  ;;  %1369 = vmatprep.subr.bf16.mxu0 %v1484_v40 }
  0x2a   : > { %1391 = vmatprep.subr.bf16.mxu1 %v1486_v42  ;;  %1003 = vmatprep.mubr.bf16.mxu0 %v1513_v4 }
  0x2b   : > { %1044 = vmatprep.mubr.bf16.mxu1 %v1518_v8 }
  0x2c   : > { %1370 = vmatpush3.bf16.msra.mxu0 %v1485_v41 }
  0x2d   : > { %1392 = vmatpush3.bf16.msra.mxu1 %v1487_v43  ;;  %1371 = vmatprep.subr.bf16.mxu0 %v1488_v44 }
  0x2e   : > { %1393 = vmatprep.subr.bf16.mxu1 %v1490_v46 }
  0x30   : > { %1372 = vmatpush3.bf16.msra.mxu0 %v1489_v45 }
  0x31   : > { %1394 = vmatpush3.bf16.msra.mxu1 %v1491_v47  ;;  %1373 = vmatprep.subr.bf16.mxu0 %v1492_v48 }
  0x32   : > { %1395 = vmatprep.subr.bf16.mxu1 %v1494_v50 }
  0x34   : > { %1374 = vmatpush3.bf16.msra.mxu0 %v1493_v49 }
  0x35   : > { %1396 = vmatpush3.bf16.msra.mxu1 %v1495_v51  ;;  %1375 = vmatprep.subr.bf16.mxu0 %v1496_v52 }
  0x36   : > { %1397 = vmatprep.subr.bf16.mxu1 %v1498_v54 }
  0x38   : > { %1376 = vmatpush3.bf16.msra.mxu0 %v1497_v53 }
  0x39   : > { %1398 = vmatpush3.bf16.msra.mxu1 %v1499_v55  ;;  %1377 = vmatprep.subr.bf16.mxu0 %v1500_v56 }
  0x3a   : > { %1399 = vmatprep.subr.bf16.mxu1 %v1502_v58 }
  0x3c   : > { %1378 = vmatpush3.bf16.msra.mxu0 %v1501_v57 }
  0x3d   : > { %1400 = vmatpush3.bf16.msra.mxu1 %v1503_v59  ;;  %1379 = vmatprep.subr.bf16.mxu0 %v1504_v60 }
  0x3e   : > { %1401 = vmatprep.subr.bf16.mxu1 %v1506_v62 }
  0x40   : > { %1380 = vmatpush3.bf16.msra.mxu0 %v1505_v61 }
  0x41   : > { %1402 = vmatpush3.bf16.msra.mxu1 %v1507_v63  ;;  %1381 = vmatprep.subr.bf16.mxu0 %v1508_v0 }
  0x42   : > { %1403 = vmatprep.subr.bf16.mxu1 %v1510_v2 }
  0x44   : > { %1382 = vmatpush3.bf16.msra.mxu0 %v1509_v1 }
  0x45   : > { %1404 = vmatpush3.bf16.msra.mxu1 %v1514_v5  ;;  %1411 = vmatprep.subr.bf16.mxu0 %v1515_v6 }
  0x47   : > { %1004 = vmatmul.mubr.bf16.vlgmr.msra.gmra.mrb[4].mxu0 %v1511_v3 }
  0x48   : > { %1412 = vmatpush3.bf16.msra.mxu0 %v1519_v9  ;;  %1045 = vmatmul.mubr.bf16.vlgmr.msra.gmra.mrb[4].mxu1 %v1516_v7 }
  0x49   : > { %1413 = vmatprep.subr.bf16.mxu0 %v1520_v10  ;;  %1085 = vmatprep.mubr.bf16.mxu0 %v1536_v19 }
  0x4c   : > { %1414 = vmatpush3.bf16.msra.mxu0 %v1521_v11 }
  0x4d   : > { %1415 = vmatprep.subr.bf16.mxu0 %v1522_v12 }
  0x50   : > { %1416 = vmatpush3.bf16.msra.mxu0 %v1523_v13 }
  0x51   : > { %1417 = vmatprep.subr.bf16.mxu0 %v1524_v14 }
  0x54   : > { %1418 = vmatpush3.bf16.msra.mxu0 %v1525_v15 }
  0x55   : > { %1419 = vmatprep.subr.bf16.mxu0 %v1526_v16 }
  0x58   : > { %1420 = vmatpush3.bf16.msra.mxu0 %v1527_v17 }
  0x59   : > { %1421 = vmatprep.subr.bf16.mxu0 %v1528_v18 }
  0x5c   : > { %1422 = vmatpush3.bf16.msra.mxu0 %v1529_v20 }
  0x5d   : > { %1423 = vmatprep.subr.bf16.mxu0 %v1530_v21 }
  0x60   : > { %1424 = vmatpush3.bf16.msra.mxu0 %v1531_v22 }
  0x61   : > { %1425 = vmatprep.subr.bf16.mxu0 %v1532_v23 }
  0x64   : > { %1426 = vmatpush3.bf16.msra.mxu0 %v1533_v24 }
  0x67   : > { %1086 = vmatmul.mubr.bf16.vlgmr.msra.gmra.mrb[8].mxu0 %v1534_v25 }
  0xfa   : > { %v1339_v26 = vpop.f32.mrb[0].mxu0 }
  0xfb   : > { %v1361_v27 = vpop.f32.mrb[0].mxu1  ;;  %v1340_v28 = vpop.f32.mrb[1].mxu0 }
  0xfc   : > { %v1341_v29 = vadd.f32 %v1340_v28, %v1339_v26  ;;  %v1362_v30 = vpop.f32.mrb[1].mxu1  ;;  %v1342_v31 = vpop.f32.mrb[2].mxu0 }
  0xfd   : > { %v1363_v32 = vadd.f32 %v1362_v30, %v1361_v27  ;;  %v1364_v33 = vpop.f32.mrb[2].mxu1  ;;  %v1343_v34 = vpop.f32.mrb[3].mxu0 }
  0xfe   : > { %v1344_v35 = vadd.f32 %v1343_v34, %v1342_v31  ;;  %v1365_v36 = vpop.f32.mrb[3].mxu1 }
  0xff   : > { %v965_v37 = vadd.f32 %v1363_v32, %v1341_v29  ;;  %v1366_v38 = vadd.f32 %v1365_v36, %v1364_v33 }
 0x101   : > { %v968_v39 = vadd.f32 %v1366_v38, %v1344_v35 }
 0x11a   : > { %v1383_v40 = vpop.f32.mrb[4].mxu0 }
 0x11b   : > { %v1384_v41 = vpop.f32.mrb[5].mxu0  ;;  %v1405_v46 = vpop.f32.mrb[4].mxu1 }
 0x11c   : > { %v1385_v42 = vadd.f32 %v1384_v41, %v1383_v40  ;;  %v1386_v43 = vpop.f32.mrb[6].mxu0  ;;  %v1406_v48 = vpop.f32.mrb[5].mxu1 }
 0x11d   : > { %v1387_v44 = vpop.f32.mrb[7].mxu0  ;;  %v1407_v50 = vadd.f32 %v1406_v48, %v1405_v46  ;;  %v1408_v51 = vpop.f32.mrb[6].mxu1 }
 0x11e   : > { %v1006_v45 = vadd.f32 %v1385_v42, %v965_v37  ;;  %v1388_v47 = vadd.f32 %v1387_v44, %v1386_v43  ;;  %v1409_v52 = vpop.f32.mrb[7].mxu1 }
 0x11f   : > { %v1410_v54 = vadd.f32 %v1409_v52, %v1408_v51 }
 0x120   : > { %v1009_v49 = vadd.f32 %v1388_v47, %v968_v39  ;;  %v1047_v53 = vadd.f32 %v1407_v50, %v1006_v45 }
 0x122   : > { %v1050_v55 = vadd.f32 %v1410_v54, %v1009_v49 }
 0x13a   : > { %v1427_v56 = vpop.f32.mrb[8].mxu0 }
 0x13b   : > { %v1428_v57 = vpop.f32.mrb[9].mxu0 }
 0x13c   : > { %v1429_v58 = vadd.f32 %v1428_v57, %v1427_v56  ;;  %v1430_v59 = vpop.f32.mrb[10].mxu0 }
 0x13d   : > { %v1431_v60 = vpop.f32.mrb[11].mxu0 }
 0x13e   : > { %v1088_v61 = vadd.f32 %v1429_v58, %v1047_v53  ;;  %v1432_v62 = vadd.f32 %v1431_v60, %v1430_v59 }
 0x140   : > { %v1091_v63 = vadd.f32 %v1432_v62, %v1050_v55  ;;  %v1111_v0 = vmul.f32 %v1088_v61, %v1088_v61 }
 0x142   : > { %v1321_v1 = vpack.c.bf16 %v1091_v63, %v1088_v61  ;;  %v1104_v2 = vadd.f32 %v1091_v63, %v1088_v61  ;;  %v1112_v3 = vmul.f32 %v1091_v63, %v1091_v63 }
 0x144   : > { %1322 = vst [vmem:[%s182_s15] sm:$0xff] %v1321_v1   ;;  %v1105_v4 = vrot.slane %v1104_v2, 4  ;;  %v1113_v5 = vadd.f32 %v1112_v3, %v1111_v0 }
 0x146   : > { %v1106_v6 = vadd.f32 %v1105_v4, %v1104_v2  ;;  %v1114_v7 = vrot.slane %v1113_v5, 4 }
 0x148   : > { %v1107_v8 = vrot.slane %v1106_v6, 2  ;;  %v1115_v9 = vadd.f32 %v1114_v7, %v1113_v5 }
 0x14a   : > { %v1108_v10 = vadd.f32 %v1107_v8, %v1106_v6  ;;  %v1116_v11 = vrot.slane %v1115_v9, 2 }
 0x14c   : > { %v1109_v12 = vrot.slane %v1108_v10, 1  ;;  %v1117_v13 = vadd.f32 %v1116_v11, %v1115_v9 }
 0x14e   : > { %v1118_v14 = vrot.slane %v1117_v13, 1  ;;  %v1110_v15 = vadd.f32 %v1109_v12, %v1108_v10 }
 0x150   : > { %v1119_v16 = vadd.f32 %v1118_v14, %v1117_v13 }
 0x152   : > { %v1121_v17 = vsel %vm1120_vm0, %v1110_v15, %v1119_v16 }
 0x153   : > { %v1123_v18 = vsel %vm1122_vm1, %v1121_v17, 0.0 }
 0x154   : > { %1124 = vst [vmem:[%s187_s18] sm:$0xff] %v1123_v18 }
 0x155 PF: > { %s14_s12 = sadd.s32 1, %s1543_s12  }
 0x156   : > { %p11_p5 = scmp.ge.s32.totalorder %s14_s12, 4  }
 0x158   :  { %13 = sbr.rel (!%p11_p5) target bundleno = 1 (0x1), region = 70 }

</bundles_post_ra>
